<compile_context>
chip_gen: v7x
topology: tpu7x:2x2x1
jax: 0.10.0
libtpu: 0.0.40
codegen_flags: <defaults>
</compile_context>

<pallas_src>
import math
from functools import partial

import jax
import jax.numpy as jnp
import numpy as np
from jax.experimental import pallas as pl
from jax.experimental.pallas import tpu as pltpu


# --------------------------------- the kernel --------------------------------

def mlp_kernel(*refs, num_layers, matmul_dtype):
    """refs = (x_ref, w0, b0, w1, b1, ..., w_{L-1}, b_{L-1}, out_ref)."""
    x_ref = refs[0]
    out_ref = refs[-1]
    params = refs[1:-1]

    h = x_ref[...]                       # (TILE_M, d_in), f32
    for i in range(num_layers):          # small static loop, fully unrolled
        w = params[2 * i][...]
        b = params[2 * i + 1][...]
        h = jnp.dot(h.astype(matmul_dtype), w.astype(matmul_dtype),
                    preferred_element_type=jnp.float32) + b
        if i < num_layers - 1:
            h = jnp.maximum(h, 0.0)      # ReLU (f32, VPU)
    out_ref[...] = h                     # single store of the final block


# --------------------------------- wrapper ------------------------------------

def mlp_pallas(x, weights, biases, *, tile_m=8, matmul_dtype=jnp.float32):
    """x: (..., input_dim); weights[i]: (d_in_i, d_out_i); biases[i]: (d_out_i,)."""
    num_layers = len(weights)
    lead_shape = x.shape[:-1]
    in_dim = x.shape[-1]
    out_dim = weights[-1].shape[1]

    # Fold every leading dim into the matmul M dimension.
    m_total = 1
    for s in lead_shape:
        m_total *= s
    x2 = x.reshape(m_total, in_dim).astype(jnp.float32)

    tile_m = min(tile_m, m_total)
    m_pad = -(-m_total // tile_m) * tile_m
    if m_pad != m_total:
        x2 = jnp.pad(x2, ((0, m_pad - m_total), (0, 0)))
    grid = (m_pad // tile_m,)

    # Flatten params; biases kept 2-D (1, d_out) for a TPU-friendly layout.
    flat_params = []
    for w, b in zip(weights, biases):
        flat_params.append(w.astype(jnp.float32))
        flat_params.append(b.reshape(1, -1).astype(jnp.float32))

    in_specs = [pl.BlockSpec((tile_m, in_dim), lambda i: (i, 0))]
    for p in flat_params:
        # Full-array block with a constant index_map -> stays resident in VMEM.
        in_specs.append(pl.BlockSpec(p.shape, lambda i, _nd=p.ndim: (0,) * _nd))

    out = pl.pallas_call(
        partial(mlp_kernel, num_layers=num_layers, matmul_dtype=matmul_dtype),
        out_shape=jax.ShapeDtypeStruct((m_pad, out_dim), jnp.float32),
        grid=grid,
        in_specs=in_specs,
        out_specs=pl.BlockSpec((tile_m, out_dim), lambda i: (i, 0)),
        compiler_params=pltpu.CompilerParams(
            dimension_semantics=("parallel",)),
    )(x2, *flat_params)

    return out[:m_total].reshape(*lead_shape, out_dim)


# ----------------------------- deterministic params ---------------------------

def init_mlp_params(key, input_dim, hidden_dim, output_dim, num_layers):
    """Matches nn.Linear default init; weights pre-transposed to (in, out)."""
    dims = [input_dim] + [hidden_dim] * (num_layers - 1) + [output_dim]
    weights, biases = [], []
    keys = jax.random.split(key, num_layers)
    for i in range(num_layers):
        din, dout = dims[i], dims[i + 1]
        k1, k2 = jax.random.split(keys[i])
        bound = 1.0 / math.sqrt(din)
        weights.append(jax.random.uniform(k1, (din, dout), jnp.float32,
                                          -bound, bound))
        biases.append(jax.random.uniform(k2, (dout,), jnp.float32,
                                         -bound, bound))
    return weights, biases


# ------------------------------ pure-JAX reference ----------------------------

def ref_mlp(x, weights, biases):
    hi = jax.lax.Precision.HIGHEST
    h = x
    num_layers = len(weights)
    for i, (w, b) in enumerate(zip(weights, biases)):
        h = jnp.dot(h, w, precision=hi) + b
        if i < num_layers - 1:
            h = jnp.maximum(h, 0.0)
    return h


# ------------------------------------ main ------------------------------------

if __name__ == "__main__":
    # Small config consistent with the module's forward:
    # x: (batch=2, seq=8, input_dim=32), hidden=64, output=32, 3 layers.
    B, N = 2, 8
    INPUT_DIM, HIDDEN_DIM, OUTPUT_DIM, NUM_LAYERS = 32, 64, 32, 3

    key = jax.random.PRNGKey(0)
    k_in, k_par = jax.random.split(key)
    x = jax.random.normal(k_in, (B, N, INPUT_DIM), jnp.float32)
    weights, biases = init_mlp_params(k_par, INPUT_DIM, HIDDEN_DIM,
                                      OUTPUT_DIM, NUM_LAYERS)

    # f32 path: (B*N=16 rows, tile_m=8 -> grid=(2,), even for v7x's two TCs).
    out = jax.block_until_ready(mlp_pallas(x, weights, biases, tile_m=8))
    ref = jax.block_until_ready(ref_mlp(x, weights, biases))
    np.testing.assert_allclose(np.asarray(out), np.asarray(ref),
                               rtol=1e-2, atol=1e-2)

    # bf16-at-the-MXU path (perf feedback for v6e/v7x); math outside the dot
    # stays in f32, so this is also safe on v5e's f32-only VPU/EUP.
    out_bf16 = jax.block_until_ready(
        mlp_pallas(x, weights, biases, tile_m=8, matmul_dtype=jnp.bfloat16))
    np.testing.assert_allclose(np.asarray(out_bf16), np.asarray(ref),
                               rtol=1e-1, atol=1e-1)

    print("KERNEL_OK")
</pallas_src>

<mosaic_0001>
module attributes {stable_mosaic.version = 11 : i64} {
  func.func @mlp_kernel(%arg0: i32, %arg1: memref<8x32xf32, #tpu.memory_space<vmem>>, %arg2: memref<32x64xf32, #tpu.memory_space<vmem>>, %arg3: memref<1x64xf32, #tpu.memory_space<vmem>>, %arg4: memref<64x64xf32, #tpu.memory_space<vmem>>, %arg5: memref<1x64xf32, #tpu.memory_space<vmem>>, %arg6: memref<64x32xf32, #tpu.memory_space<vmem>>, %arg7: memref<1x32xf32, #tpu.memory_space<vmem>>, %arg8: memref<8x32xf32, #tpu.memory_space<vmem>>) attributes {dimension_semantics = [#tpu.dimension_semantics<parallel>], iteration_bounds = array<i64: 2>, scalar_prefetch = 0 : i64, scratch_operands = 0 : i64, tpu.core_type = #tpu.core_type<tc>, window_params = [{transform_indices = @transform_0, window_bounds = array<i64: 8, 32>}, {pipeline_mode = #tpu.pipeline_mode<synchronous>, transform_indices = @transform_1, window_bounds = array<i64: 32, 64>}, {pipeline_mode = #tpu.pipeline_mode<synchronous>, transform_indices = @transform_2, window_bounds = array<i64: 1, 64>}, {pipeline_mode = #tpu.pipeline_mode<synchronous>, transform_indices = @transform_3, window_bounds = array<i64: 64, 64>}, {pipeline_mode = #tpu.pipeline_mode<synchronous>, transform_indices = @transform_4, window_bounds = array<i64: 1, 64>}, {pipeline_mode = #tpu.pipeline_mode<synchronous>, transform_indices = @transform_5, window_bounds = array<i64: 64, 32>}, {pipeline_mode = #tpu.pipeline_mode<synchronous>, transform_indices = @transform_6, window_bounds = array<i64: 1, 32>}, {transform_indices = @transform_7, window_bounds = array<i64: 8, 32>}]} {
    %c0 = arith.constant 0 : index
    %c0_0 = arith.constant 0 : index
    %0 = vector.load %arg1[%c0, %c0_0] : memref<8x32xf32, #tpu.memory_space<vmem>>, vector<8x32xf32>
    %c0_1 = arith.constant 0 : index
    %c0_2 = arith.constant 0 : index
    %1 = vector.load %arg2[%c0_1, %c0_2] : memref<32x64xf32, #tpu.memory_space<vmem>>, vector<32x64xf32>
    %c0_3 = arith.constant 0 : index
    %c0_4 = arith.constant 0 : index
    %2 = vector.load %arg3[%c0_3, %c0_4] : memref<1x64xf32, #tpu.memory_space<vmem>>, vector<1x64xf32>
    %cst = arith.constant dense<0.000000e+00> : vector<8x64xf32>
    %3 = tpu.matmul %0, %1, %cst {dimension_numbers = #tpu.dot_dimension_numbers<[1], [0], [0], [1], [0, 0, 1, 1], [], []>} : vector<8x32xf32>, vector<32x64xf32>, vector<8x64xf32> -> vector<8x64xf32>
    %4 = vector.broadcast %2 : vector<1x64xf32> to vector<8x64xf32>
    %5 = arith.addf %3, %4 : vector<8x64xf32>
    %cst_5 = arith.constant 0.000000e+00 : f32
    %6 = vector.broadcast %cst_5 : f32 to vector<8x64xf32>
    %7 = arith.maximumf %5, %6 : vector<8x64xf32>
    %c0_6 = arith.constant 0 : index
    %c0_7 = arith.constant 0 : index
    %8 = vector.load %arg4[%c0_6, %c0_7] : memref<64x64xf32, #tpu.memory_space<vmem>>, vector<64x64xf32>
    %c0_8 = arith.constant 0 : index
    %c0_9 = arith.constant 0 : index
    %9 = vector.load %arg5[%c0_8, %c0_9] : memref<1x64xf32, #tpu.memory_space<vmem>>, vector<1x64xf32>
    %cst_10 = arith.constant dense<0.000000e+00> : vector<8x64xf32>
    %10 = tpu.matmul %7, %8, %cst_10 {dimension_numbers = #tpu.dot_dimension_numbers<[1], [0], [0], [1], [0, 0, 1, 1], [], []>} : vector<8x64xf32>, vector<64x64xf32>, vector<8x64xf32> -> vector<8x64xf32>
    %11 = vector.broadcast %9 : vector<1x64xf32> to vector<8x64xf32>
    %12 = arith.addf %10, %11 : vector<8x64xf32>
    %cst_11 = arith.constant 0.000000e+00 : f32
    %13 = vector.broadcast %cst_11 : f32 to vector<8x64xf32>
    %14 = arith.maximumf %12, %13 : vector<8x64xf32>
    %c0_12 = arith.constant 0 : index
    %c0_13 = arith.constant 0 : index
    %15 = vector.load %arg6[%c0_12, %c0_13] : memref<64x32xf32, #tpu.memory_space<vmem>>, vector<64x32xf32>
    %c0_14 = arith.constant 0 : index
    %c0_15 = arith.constant 0 : index
    %16 = vector.load %arg7[%c0_14, %c0_15] : memref<1x32xf32, #tpu.memory_space<vmem>>, vector<1x32xf32>
    %cst_16 = arith.constant dense<0.000000e+00> : vector<8x32xf32>
    %17 = tpu.matmul %14, %15, %cst_16 {dimension_numbers = #tpu.dot_dimension_numbers<[1], [0], [0], [1], [0, 0, 1, 1], [], []>} : vector<8x64xf32>, vector<64x32xf32>, vector<8x32xf32> -> vector<8x32xf32>
    %18 = vector.broadcast %16 : vector<1x32xf32> to vector<8x32xf32>
    %19 = arith.addf %17, %18 : vector<8x32xf32>
    %c0_17 = arith.constant 0 : index
    %c0_18 = arith.constant 0 : index
    %20 = vector.load %arg8[%c0_17, %c0_18] : memref<8x32xf32, #tpu.memory_space<vmem>>, vector<8x32xf32>
    tpu.vector_store %arg8[%c0_17, %c0_18], %19 {strides = array<i32>} : memref<8x32xf32, #tpu.memory_space<vmem>>, vector<8x32xf32>,
    return
  }
  func.func @transform_0(%arg0: i32) -> (i32, i32) {
    %c0_i32 = arith.constant 0 : i32
    %c0_i32_0 = arith.constant 0 : i32
    return %arg0, %c0_i32 : i32, i32
  }
  func.func @transform_1(%arg0: i32) -> (i32, i32) {
    %c0_i32 = arith.constant 0 : i32
    %c0_i32_0 = arith.constant 0 : i32
    %c0_i32_1 = arith.constant 0 : i32
    return %c0_i32, %c0_i32_0 : i32, i32
  }
  func.func @transform_2(%arg0: i32) -> (i32, i32) {
    %c0_i32 = arith.constant 0 : i32
    %c0_i32_0 = arith.constant 0 : i32
    %c0_i32_1 = arith.constant 0 : i32
    return %c0_i32, %c0_i32_0 : i32, i32
  }
  func.func @transform_3(%arg0: i32) -> (i32, i32) {
    %c0_i32 = arith.constant 0 : i32
    %c0_i32_0 = arith.constant 0 : i32
    %c0_i32_1 = arith.constant 0 : i32
    return %c0_i32, %c0_i32_0 : i32, i32
  }
  func.func @transform_4(%arg0: i32) -> (i32, i32) {
    %c0_i32 = arith.constant 0 : i32
    %c0_i32_0 = arith.constant 0 : i32
    %c0_i32_1 = arith.constant 0 : i32
    return %c0_i32, %c0_i32_0 : i32, i32
  }
  func.func @transform_5(%arg0: i32) -> (i32, i32) {
    %c0_i32 = arith.constant 0 : i32
    %c0_i32_0 = arith.constant 0 : i32
    %c0_i32_1 = arith.constant 0 : i32
    return %c0_i32, %c0_i32_0 : i32, i32
  }
  func.func @transform_6(%arg0: i32) -> (i32, i32) {
    %c0_i32 = arith.constant 0 : i32
    %c0_i32_0 = arith.constant 0 : i32
    %c0_i32_1 = arith.constant 0 : i32
    return %c0_i32, %c0_i32_0 : i32, i32
  }
  func.func @transform_7(%arg0: i32) -> (i32, i32) {
    %c0_i32 = arith.constant 0 : i32
    %c0_i32_0 = arith.constant 0 : i32
    return %arg0, %c0_i32 : i32, i32
  }
}

</mosaic_0001>

<bundles_post_ra>
// kernel: tpu_custom_call.1
= control target key start
LH: loop header
LB: loop body
LE: loop exit
PB: predicated region body
PF: predicated region fallthrough
CT: control target
= control target key end

     0   :  { %12 = vsyncpa [#allocation3], 0  ;;  %s1195_s0 = inlined_call_operand.hbm [shape: f32[16,32], index: 0, kind: input, shape index: {}]   ;;  %s1196_s1 = inlined_call_operand.vmem [shape: f32[32,64], index: 1, kind: input, shape index: {}]   ;;  %s1197_s2 = inlined_call_operand.vmem [shape: f32[1,64], index: 2, kind: input, shape index: {}]   ;;  %s1198_s3 = inlined_call_operand.vmem [shape: f32[64,64], index: 3, kind: input, shape index: {}]   ;;  %s1199_s4 = inlined_call_operand.vmem [shape: f32[1,64], index: 4, kind: input, shape index: {}]   ;;  %s1200_s5 = inlined_call_operand.vmem [shape: f32[64,32], index: 5, kind: input, shape index: {}]   ;;  %s1201_s6 = inlined_call_operand.vmem [shape: f32[1,32], index: 6, kind: input, shape index: {}]   ;;  %s1202_s7 = inlined_call_operand.hbm [shape: f32[16,32], index: 7, kind: output, shape index: {}]  }
   0x1   :  { %14 = vsyncpa [#allocation3 + $0x1], 0 }
   0x2   :  { %15 = vsyncpa [#allocation4], 0 }
   0x3   :  { %17 = vsyncpa [#allocation4 + $0x1], 0  ;;  %s956_s24 = smov 0   ;;  %s958_s25 = smov 0  }
   0x4   :  { %s960_s26 = smov 0   ;;  %s962_s27 = smov 0  }
   0x5 LB: > { %s977_s28 = sadd.s32 4294967295, %s909_s27   ;;  %s644_s29 = sadd.s32 4294967294, %s909_s27   ;;  %s909_s27 = sphi %s962_s27, %s1217_s27   ;;  %s905_s26 = sphi %s960_s26, %s1216_s26   ;;  %s901_s25 = sphi %s958_s25, %s1215_s25   ;;  %s897_s24 = sphi %s956_s24, %s1214_s24  }
   0x6   : > { %s981_s30 = sadd.s32 1, %s909_s27   ;;  %s30_s8 = sadd.s32 1, %s905_s26 }
   0x7   : > { %s27_s9 = ssub.s32 %s909_s27, %s981_s30  ;;  %p37_p0 = scmp.ne.s32.totalorder %s905_s26, %s901_s25 }
   0x8   : > { %p28_p1 = scmp.eq.s32.totalorder %s27_s9, 0  ;;  %p38_p2 = scmp.eq.s32.totalorder %s909_s27, 0 }
   0x9   : > { %p43_p3 = scmp.ne.s32.totalorder %s901_s25, %s897_s24  ;;  %p44_p4 = scmp.eq.s32.totalorder %s977_s28, 0 }
   0xa   : > { %s993_s10 = scalar_select %p28_p1, %s905_s26, %s30_s8  }
   0xb   : > { %p995_p5 = por %p38_p2, %p37_p0  ;;  %p999_p6 = por %p44_p4, %p43_p3 }
   0xc   : > { %p193_p7 = scmp.eq.s32.totalorder %s977_s28, 1  ;;  %p199_p8 = scmp.eq.s32.totalorder %s644_s29, 1 }
   0xd   : > { %p776_p10 = scmp.lt.s32.totalorder %s909_s27, 2  ;;  %s237_s15 = sand.u32 1, %s905_s26  }
   0xe   : > { %p1006_p11 = por %p193_p7, %p37_p0  ;;  %p1010_p12 = por %p199_p8, %p43_p3 }
   0xf   : > { %s648_s16 = sshll.u32 %s909_s27, 7  ;;  %s647_s17 = sshll.u32 %s237_s15, 3 }
  0x10   : > { %s1206_s13 = scalar_select %p1006_p11, 1, 0 }
  0x11   : > { %s1207_s14 = scalar_select %p1010_p12, 1, 0 }
  0x12   : > { %s1019_s20 = scalar_lea.hbm %s1195_s0, %s648_s16  ;;  %s241_s21 = scalar_lea.vmem [#allocation2], %s647_s17 }
  0x13   : > { %s248_s22 = sshll.u32 %s241_s21, 4  ;;  %p1023_p13 = pnand %p776_p10, %p995_p5  ;;  %s1027_s22 = int_to_ptr.vmem [resolvable:$true] %s248_s22 }
  0x14   : > { %s238_s29 = scalar_lea.sflag [#allocation3], %s237_s15  ;;  %s813_s8 = scalar_lea.hbm %s1019_s20, 128 }
  0x15   : > { %p814_p2 = scmp.ne.s32.totalorder %s1019_s20, %s813_s8  ;;  %p815_p3 = pneg %p1023_p13 }
  0x16   : > { %s818_s16 = scalar_lea.hbm %s1195_s0, 256  ;;  %p819_p5 = scmp.lt.u32.totalorder %s1019_s20, %s1195_s0 }
  0x17   : > { %p816_p4 = pnand %p815_p3, %p814_p2  ;;  %p820_p8 = scmp.lt.u32.totalorder %s818_s16, %s813_s8 }
  0x18   : > { %p822_p9 = scmp.lt.u32.totalorder %s813_s8, %s1019_s20 }
  0x19   : > { %p817_p7 = pneg %p816_p4  ;;  %p821_p10 = por %p820_p8, %p819_p5 }
  0x1b   : > { %p823_p0 = por %p822_p9, %p821_p10 }
  0x1d   : > { %p824_p1 = pnand %p823_p0, %p817_p7 }
  0x1f   : > { %827 = shalt.err (!%p824_p1)
}
  0x20   : > { %s828_s15 = scalar_lea.vmem %s1027_s22, 128  ;;  %s911_s19 = smov [#allocation2]  }
  0x21   : > { %p829_p2 = scmp.ne.s32.totalorder %s1027_s22, %s828_s15  ;;  %s833_s21 = sshll.u32 %s911_s19, 4  ;;  %s834_s21 = int_to_ptr.vmem [resolvable:$false] %s833_s21 }
  0x22   : > { %s835_s9 = scalar_lea.vmem %s834_s21, 256  ;;  %p836_p11 = scmp.lt.s32.totalorder %s1027_s22, %s834_s21 }
  0x23   : > { %p831_p4 = pnand %p829_p2, %p815_p3  ;;  %p837_p5 = scmp.lt.s32.totalorder %s835_s9, %s828_s15 }
  0x25   : > { %p832_p12 = pneg %p831_p4  ;;  %p838_p8 = por %p837_p5, %p836_p11 }
  0x27   : > { %p839_p9 = pnand %p838_p8, %p832_p12 }
  0x29   : > { %842 = shalt.err (!%p839_p9)
}
  0x2a   : > { %771 = dma.hbm_to_vmem [thread:$0]  (!%p1023_p13), %s1019_s20, 128, %s1027_s22, %s238_s29  }
  0x2b   : > { %p1209_p0 = scmp.lt.s32.totalorder %s909_s27, 3  ;;  %p1210_p1 = scmp.ge.s32.totalorder %s909_s27, 1 }
  0x2d   : > { %p254_p3 = pnand %p1210_p1, %p1209_p0 }
  0x2e   : > { %s1061_s8 = sand.u32 (!%p254_p3), 1, %s901_s25  }
  0x2f   : > { %257 = sbr.rel (%p254_p3) target bundleno = 725 (0x2d5), region = 48  ;;  %s650_s11 = sshll.u32 (!%p254_p3), %s1061_s8, 3 }
  0x30   : > { %s260_s16 = scalar_lea.sflag (!%p254_p3), [#allocation3], %s1061_s8  ;;  %s263_s23 = scalar_lea.vmem (!%p254_p3), [#allocation2], %s650_s11 }
  0x36   : > { %888 = dma.done.wait (%p999_p6), %s260_s16, 128  }
  0x37   : > { %890 = vsyncadd (%p999_p6), %s260_s16, 4294967168  ;;  %v912_v0 = vmov 0.0|0.0   ;;  %vm913_vm0 = vmmov 0   ;;  %v914_v1 = vmov 0.0   ;;  %v295_v2 = vld [vmem:[%s1196_s1] sm:$0xff]  ;;  %v296_v3 = vld [vmem:[%s1196_s1 + $0x8] sm:$0xff] }
  0x38   : > { %734 = vmatprep.subr.bf16.mxu0 %v912_v0  ;;  %693 = vmatprep.mubr.msk.f32.mxu0 %vm913_vm0, %v914_v1  ;;  %v297_v4 = vld [vmem:[%s1196_s1 + $0x10] sm:$0xff]  ;;  %v735_v5 = vpack.c.bf16 %v296_v3, %v295_v2  ;;  %v298_v6 = vld [vmem:[%s1196_s1 + $0x18] sm:$0xff]  ;;  %v381_v7 = vld [vmem:[%s1198_s3] sm:$0xff]  ;;  %vm306_vm1 = vcmask 261120   ;;  %vm396_vm2 = vcmask 523264   ;;  %s659_s20 = sshll.u32 %s977_s28, 7 }
  0x39   : > { %740 = vmatprep.subr.bf16.mxu1 %v912_v0  ;;  %712 = vmatprep.mubr.msk.f32.mxu1 %vm913_vm0, %v914_v1  ;;  %v382_v8 = vld [vmem:[%s1198_s3 + $0x8] sm:$0xff]  ;;  %v383_v9 = vld [vmem:[%s1198_s3 + $0x10] sm:$0xff]  ;;  %v384_v10 = vld [vmem:[%s1198_s3 + $0x18] sm:$0xff]  ;;  %v738_v11 = vpack.c.bf16 %v298_v6, %v297_v4  ;;  %s293_s22 = scalar_lea.vmem [#allocation5], %s650_s11  ;;  %s1150_s18 = scalar_lea.hbm %s1202_s7, %s659_s20 }
  0x3a   : > { %736 = vmatpush3.bf16.msra.mxu0 %v735_v5  ;;  %v741_v12 = vpack.c.bf16 %v382_v8, %v381_v7  ;;  %v744_v13 = vpack.c.bf16 %v384_v10, %v383_v9  ;;  %v385_v14 = vld [vmem:[%s1198_s3 + $0x20] sm:$0xff]  ;;  %v386_v15 = vld [vmem:[%s1198_s3 + $0x28] sm:$0xff]  ;;  %v387_v18 = vld [vmem:[%s1198_s3 + $0x30] sm:$0xff]  ;;  %s561_s12 = scalar_lea.sflag [#allocation4], %s1061_s8  ;;  %p1211_p11 = scmp.ne.s32.totalorder %s1206_s13, 0 }
  0x3b   : > { %737 = vmatprep.subr.bf16.mxu0 %v912_v0  ;;  %v294_v16 = vld [vmem:[%s263_s23] sm:$0xff]  ;;  %v747_v17 = vpack.c.bf16 %v386_v15, %v385_v14  ;;  %v388_v19 = vld [vmem:[%s1198_s3 + $0x38] sm:$0xff]  ;;  %v473_v23 = vld [vmem:[%s1200_s5 + $0x10] sm:$0xff]  ;;  %s574_s23 = sshll.u32 %s293_s22, 4  ;;  %s915_s11 = smov [#allocation5]   ;;  %s1152_s23 = int_to_ptr.vmem [resolvable:$true] %s574_s23 }
  0x3c   : > { %742 = vmatpush3.bf16.msra.mxu1 %v741_v12  ;;  %v750_v20 = vpack.c.bf16 %v388_v19, %v387_v18  ;;  %v471_v21 = vld [vmem:[%s1200_s5] sm:$0xff]  ;;  %v472_v22 = vld [vmem:[%s1200_s5 + $0x8] sm:$0xff]  ;;  %v474_v25 = vld [vmem:[%s1200_s5 + $0x18] sm:$0xff]  ;;  %s843_s28 = scalar_lea.vmem %s1152_s23, 128  ;;  %s847_s15 = sshll.u32 %s915_s11, 4  ;;  %s848_s15 = int_to_ptr.vmem [resolvable:$false] %s847_s15 }
  0x3d   : > { %743 = vmatprep.subr.bf16.mxu1 %v912_v0  ;;  %v753_v24 = vpack.c.bf16 %v472_v22, %v471_v21  ;;  %v756_v26 = vpack.c.bf16 %v474_v25, %v473_v23  ;;  %v475_v27 = vld [vmem:[%s1200_s5 + $0x20] sm:$0xff]  ;;  %v476_v28 = vld [vmem:[%s1200_s5 + $0x28] sm:$0xff]  ;;  %v477_v35 = vld [vmem:[%s1200_s5 + $0x30] sm:$0xff]  ;;  %p844_p6 = scmp.ne.s32.totalorder %s1152_s23, %s843_s28  ;;  %s849_s19 = scalar_lea.vmem %s848_s15, 256 }
  0x3e   : > { %739 = vmatpush3.bf16.msra.mxu0 %v738_v11  ;;  %v759_v29 = vpack.c.bf16 %v476_v28, %v475_v27  ;;  %v652_v30 = vld [vmem:[%s1197_s2] ss:$0 sm:$0xff]  ;;  %v478_v36 = vld [vmem:[%s1200_s5 + $0x38] sm:$0xff]  ;;  %p850_p7 = scmp.lt.s32.totalorder %s1152_s23, %s848_s15  ;;  %p851_p10 = scmp.lt.s32.totalorder %s849_s19, %s843_s28 }
  0x3f   : > { %752 = vmatprep.subr.bf16.mxu0 %v912_v0  ;;  %v762_v37 = vpack.c.bf16 %v478_v36, %v477_v35  ;;  %v654_v38 = vld [vmem:[%s1199_s4] ss:$0 sm:$0xff]  ;;  %p845_p12 = pnand %p844_p6, %p1211_p11 }
  0x40   : > { %745 = vmatpush3.bf16.msra.mxu1 %v744_v13  ;;  %v656_v43 = vld [vmem:[%s1201_s6] ss:$0 sm:$0xff]  ;;  %p852_p2 = por %p851_p10, %p850_p7 }
  0x41   : > { %694 = vmatmul.mubr.msk.f32.vlgmr.msra.gmra.mrb[0].mxu0 %vm306_vm1, %v294_v16  ;;  %746 = vmatprep.subr.bf16.mxu1 %v912_v0  ;;  %p846_p13 = pneg %p845_p12 }
  0x42   : > { %731 = vmatprep.mubr.msk.f32.mxu0 %vm913_vm0, %v914_v1  ;;  %754 = vmatpush3.bf16.msra.mxu0 %v753_v24 }
  0x43   : > { %755 = vmatprep.subr.bf16.mxu0 %v912_v0  ;;  %p853_p4 = pnand %p852_p2, %p846_p13 }
  0x44   : > { %748 = vmatpush3.bf16.msra.mxu1 %v747_v17 }
  0x45   : > { %749 = vmatprep.subr.bf16.mxu1 %v912_v0 }
  0x46   : > { %757 = vmatpush3.bf16.msra.mxu0 %v756_v26 }
  0x47   : > { %758 = vmatprep.subr.bf16.mxu0 %v912_v0 }
  0x48   : > { %751 = vmatpush3.bf16.msra.mxu1 %v750_v20 }
  0x4a   : > { %760 = vmatpush3.bf16.msra.mxu0 %v759_v29 }
  0x4b   : > { %761 = vmatprep.subr.bf16.mxu0 %v912_v0 }
  0x4e   : > { %763 = vmatpush3.bf16.msra.mxu0 %v762_v37 }
 0x114   : > { %v376_v31 = vpop.f32.mrb[0].mxu0 }
 0x115   : > { %v377_v32 = vadd.f32 %v652_v30, %v376_v31  ;;  %v695_v33 = vpop.f32.mrb[1].mxu0 }
 0x117   : > { %v380_v34 = vmax.f32 %v377_v32, 0.0 }
 0x119   : > { %713 = vmatmul.mubr.msk.f32.vlgmr.msra.gmra.mrb[0].mxu1 %vm396_vm2, %v380_v34 }
 0x1ec   : > { %v466_v39 = vpop.f32.mrb[0].mxu1 }
 0x1ed   : > { %v467_v40 = vadd.f32 %v654_v38, %v466_v39  ;;  %v714_v41 = vpop.f32.mrb[1].mxu1 }
 0x1ef   : > { %v470_v42 = vmax.f32 %v467_v40, 0.0 }
 0x1f1   : > { %732 = vmatmul.mubr.msk.f32.vlgmr.msra.gmra.mrb[2].mxu0 %vm396_vm2, %v470_v42 }
 0x2c4   : > { %v555_v44 = vpop.f32.mrb[2].mxu0 }
 0x2c5   : > { %v556_v45 = vadd.f32 %v656_v43, %v555_v44  ;;  %v733_v46 = vpop.f32.mrb[3].mxu0 }
 0x2c7   : > { %559 = vst.msk [vmem:[%s293_s22] sm:$0xff] %vm306_vm1, %v556_v45 }
 0x2c8   : > { %856 = shalt.err (!%p853_p4)
}
 0x2c9   : > { %s857_s8 = scalar_lea.hbm %s1150_s18, 128  ;;  %s861_s16 = scalar_lea.hbm %s1202_s7, 256 }
 0x2ca   : > { %p858_p5 = scmp.ne.s32.totalorder %s1150_s18, %s857_s8  ;;  %p862_p0 = scmp.lt.u32.totalorder %s1150_s18, %s1202_s7 }
 0x2cb   : > { %p863_p1 = scmp.lt.u32.totalorder %s861_s16, %s857_s8  ;;  %p865_p6 = scmp.lt.u32.totalorder %s857_s8, %s1150_s18 }
 0x2cc   : > { %p859_p8 = pnand %p858_p5, %p1211_p11 }
 0x2cd   : > { %p864_p3 = por %p863_p1, %p862_p0 }
 0x2ce   : > { %p860_p9 = pneg %p859_p8 }
 0x2cf   : > { %p866_p12 = por %p865_p6, %p864_p3 }
 0x2d1   : > { %p867_p13 = pnand %p866_p12, %p860_p9 }
 0x2d3   : > { %870 = shalt.err (!%p867_p13)
}
 0x2d4   : > { %766 = dma.vmem_to_hbm [thread:$0]  (%p1211_p11), %s1152_s23, 128, %s1150_s18, %s561_s12  }
 0x2d5 PF: > { %s586_s29 = sand.u32 1, %s897_s24   ;;  %p1212_p7 = scmp.ne.s32.totalorder %s1207_s14, 0 }
 0x2d6   : > { %p1213_p10 = scmp.ge.s32.totalorder %s909_s27, 2  ;;  %s587_s17 = scalar_lea.sflag [#allocation4], %s586_s29 }
 0x2d8   : > { %p773_p2 = pnand %p1213_p10, %p1212_p7 }
 0x2da   : > { %892 = dma.done.wait (!%p773_p2), %s587_s17, 128  }
 0x2db   : > { %894 = vsyncadd (!%p773_p2), %s587_s17, 4294967168  ;;  %p20_p4 = scmp.ge.s32.totalorder %s981_s30, 4   ;;  %s1214_s24 = smov %s901_s25 }
 0x2dc   : > { %s1215_s25 = smov %s905_s26  ;;  %s1216_s26 = smov %s993_s10 }
 0x2dd   : > { %s1217_s27 = smov %s981_s30  ;;  %22 = sbr.rel (!%p20_p4) target bundleno = 5 (0x5), region = 93 }
 0x2e4   :  { %592 = vsyncpa [#allocation3], 1 }
 0x2e5   :  { %594 = vsyncpa [#allocation3 + $0x1], 1 }
 0x2e6   :  { %595 = vsyncpa [#allocation4], 1 }
 0x2e7   :  { %597 = vsyncpa [#allocation4 + $0x1], 1 }

</bundles_post_ra>
